<compile_context>
chip_gen: v7x
topology: tpu7x:2x2x1
jax: 0.10.0
libtpu: 0.0.40
codegen_flags: <defaults>
</compile_context>

<pallas_src>
import functools
import math

import jax
import jax.numpy as jnp
from jax.experimental import pallas as pl
from jax.experimental.pallas import tpu as pltpu


def _round_up(x, m):
    return (x + m - 1) // m * m


def _sublane_multiple(dtype):
    """Sublane packing multiple for the dtype: 8 (f32), 16 (bf16/f16), 32 (i8/fp8)."""
    bits = jnp.dtype(dtype).itemsize * 8
    return max(8, 256 // bits)


def _vmem_capacity_bytes():
    try:
        cap = int(pltpu.get_tpu_info().vmem_capacity_bytes)
        if cap > 0:
            return cap
    except Exception:
        pass
    return 64 << 20  # conservative fallback (v7x per-core physical VMEM)


def _choose_layout(num_elems, itemsize, n, sublane):
    """Pick (lane, rows, padded_elems, tile_rows, vmem_limit_bytes)."""
    # Lane-dense last dim, multiple of 128; prefer one that divides num_elems
    # so no wrapper-side padding copy is needed.
    lane = None
    for cand in (2048, 1024, 512, 256, 128):
        if num_elems % cand == 0:
            lane = cand
            break
    if lane is None:
        lane = 512  # pad the flat array by <= lane-1 elements (negligible)
    padded = _round_up(num_elems, lane)
    rows = padded // lane

    cap = _vmem_capacity_bytes()
    vmem_target = min(int(cap * 3 // 4), 96 << 20)
    streams = 2 * (n + 1)                      # double-buffered, n inputs + 1 output
    tile_bytes = vmem_target // streams
    tile_bytes = max(lane * sublane * itemsize, min(tile_bytes, 6 << 20))
    budget_rows = max(sublane, (tile_bytes // (lane * itemsize)) // sublane * sublane)

    # Keep ~>= 8 grid steps when the data is big enough (megacore sharding on
    # v7x + DMA/compute overlap); never grow the tile past what the budget allows.
    steps_rows = max(sublane, _round_up(pl.cdiv(rows, 8), sublane))
    tile_rows = min(budget_rows, steps_rows)
    if tile_rows >= rows:
        tile_rows = rows  # single full-extent block (allowed even if not 8-aligned)

    total_live = streams * tile_rows * lane * itemsize
    vmem_limit = max(total_live + (8 << 20), 32 << 20)
    vmem_limit = min(vmem_limit, int(cap * 9 // 10))
    return lane, rows, padded, tile_rows, vmem_limit


def _sum_list_kernel(*refs, n, weighted):
    """refs = ([coef_smem,] x0, ..., x_{n-1}, out). Each x/out block: (TR, LANE)."""
    if weighted:
        coef_ref = refs[0]                 # SMEM (n-1,) f32: sigmoid(w) * 2
        x_refs = refs[1:1 + n]
        o_ref = refs[1 + n]
        acc = x_refs[0][...]
        for i in range(1, n):
            acc = acc + x_refs[i][...] * coef_ref[i - 1]
    else:
        x_refs = refs[:n]
        o_ref = refs[n]
        acc = x_refs[0][...]
        for i in range(1, n):
            acc = acc + x_refs[i][...]
    o_ref[...] = acc.astype(o_ref.dtype)


def _sum_stacked_kernel(*refs, n, weighted):
    """refs = ([coef_smem,] x, out). x block: (n, TR, LANE); out block: (TR, LANE)."""
    if weighted:
        coef_ref, x_ref, o_ref = refs
        acc = x_ref[0]
        for i in range(1, n):
            acc = acc + x_ref[i] * coef_ref[i - 1]
    else:
        x_ref, o_ref = refs
        acc = x_ref[0]
        for i in range(1, n):
            acc = acc + x_ref[i]
    o_ref[...] = acc.astype(o_ref.dtype)


def sum_forward(x, w=None, *, min_kernel_elems=1 << 16):
    """x: list/tuple of n same-shaped arrays OR a single array with leading axis n.
    w: optional (n-1,) raw parameter; effective weights are sigmoid(w)*2."""
    stacked = not isinstance(x, (list, tuple))
    if stacked:
        n = int(x.shape[0])
        elem_shape = tuple(x.shape[1:])
        dtype = x.dtype
    else:
        xs = list(x)
        n = len(xs)
        elem_shape = tuple(xs[0].shape)
        dtype = xs[0].dtype
        for a in xs[1:]:
            assert tuple(a.shape) == elem_shape and a.dtype == dtype, (
                "Sum: all inputs must share shape and dtype")

    if n == 1:
        return x[0] if stacked else xs[0]

    num_elems = math.prod(elem_shape)
    # Tiny tensors: pallas_call fixed cost dwarfs the work — plain XLA is faster.
    if num_elems < min_kernel_elems:
        return sum_reference(x, w)

    itemsize = jnp.dtype(dtype).itemsize
    sublane = _sublane_multiple(dtype)
    lane, rows, padded, tile_rows, vmem_limit = _choose_layout(
        num_elems, itemsize, n, sublane)

    weighted = w is not None
    coef = jax.nn.sigmoid(w.astype(jnp.float32)) * 2.0 if weighted else None

    grid = (pl.cdiv(rows, tile_rows),)
    out_spec = pl.BlockSpec((tile_rows, lane), lambda i: (i, 0))
    compiler_params = pltpu.CompilerParams(
        dimension_semantics=("parallel",),
        vmem_limit_bytes=int(vmem_limit),
    )

    if stacked:
        xf = x.reshape(n, num_elems)
        if padded != num_elems:
            xf = jnp.pad(xf, ((0, 0), (0, padded - num_elems)))
        args = [xf.reshape(n, rows, lane)]
        in_specs = [pl.BlockSpec((n, tile_rows, lane), lambda i: (0, i, 0))]
        kernel = functools.partial(_sum_stacked_kernel, n=n, weighted=weighted)
    else:
        def prep(a):
            flat = a.reshape(num_elems)
            if padded != num_elems:
                flat = jnp.pad(flat, (0, padded - num_elems))
            return flat.reshape(rows, lane)
        args = [prep(a) for a in xs]
        in_specs = [pl.BlockSpec((tile_rows, lane), lambda i: (i, 0))] * n
        kernel = functools.partial(_sum_list_kernel, n=n, weighted=weighted)

    if weighted:
        in_specs = [pl.BlockSpec(memory_space=pltpu.MemorySpace.SMEM)] + in_specs
        args = [coef] + args

    out2d = pl.pallas_call(
        kernel,
        out_shape=jax.ShapeDtypeStruct((rows, lane), dtype),
        grid_spec=pl.GridSpec(grid=grid, in_specs=in_specs, out_specs=out_spec),
        compiler_params=compiler_params,
    )(*args)

    if padded != num_elems:
        return out2d.reshape(-1)[:num_elems].reshape(elem_shape)
    return out2d.reshape(elem_shape)


def sum_reference(x, w=None):
    """Pure-JAX reference matching the PyTorch Sum module."""
    xs = list(x) if isinstance(x, (list, tuple)) else [x[i] for i in range(x.shape[0])]
    y = xs[0]
    if w is not None:
        coef = jax.nn.sigmoid(w.astype(jnp.float32)) * 2.0
        for i in range(1, len(xs)):
            y = y + xs[i] * coef[i - 1]
    else:
        for i in range(1, len(xs)):
            y = y + xs[i]
    return y


if __name__ == "__main__":
    key = jax.random.PRNGKey(0)
    n = 3
    B, C, H, W = 2, 4, 16, 16
    keys = jax.random.split(key, n)
    xs = [jax.random.normal(k, (B, C, H, W), dtype=jnp.float32) for k in keys]

    # Sum(n, weight=False) — force the Pallas kernel even at this small test shape.
    out = jax.block_until_ready(sum_forward(xs, min_kernel_elems=0))
    ref = sum_reference(xs)
    assert out.shape == ref.shape, (out.shape, ref.shape)
    assert jnp.allclose(out, ref, atol=1e-5, rtol=1e-5), (
        float(jnp.max(jnp.abs(out - ref))))

    # Sum(n, weight=True): parameter initialized like torch: -arange(1., n)/2
    w = -jnp.arange(1.0, n, dtype=jnp.float32) / 2.0
    out_w = jax.block_until_ready(sum_forward(xs, w, min_kernel_elems=0))
    ref_w = sum_reference(xs, w)
    assert jnp.allclose(out_w, ref_w, atol=1e-5, rtol=1e-5), (
        float(jnp.max(jnp.abs(out_w - ref_w))))

    # Stacked (n, ...) input with a non-128-divisible element count
    # (exercises the single-operand stacked path + ragged/pad handling).
    x_stacked = jax.random.normal(key, (n, 2, 3, 17, 19), dtype=jnp.float32)
    out_s = jax.block_until_ready(sum_forward(x_stacked, w, min_kernel_elems=0))
    ref_s = sum_reference(x_stacked, w)
    assert out_s.shape == ref_s.shape, (out_s.shape, ref_s.shape)
    assert jnp.allclose(out_s, ref_s, atol=1e-5, rtol=1e-5), (
        float(jnp.max(jnp.abs(out_s - ref_s))))

    print("KERNEL_OK")
</pallas_src>

<mosaic_0001>
module attributes {stable_mosaic.version = 11 : i64} {
  func.func @_sum_list_kernel(%arg0: i32, %arg1: memref<1x2048xf32, #tpu.memory_space<vmem>>, %arg2: memref<1x2048xf32, #tpu.memory_space<vmem>>, %arg3: memref<1x2048xf32, #tpu.memory_space<vmem>>, %arg4: memref<1x2048xf32, #tpu.memory_space<vmem>>) attributes {dimension_semantics = [#tpu.dimension_semantics<parallel>], iteration_bounds = array<i64: 1>, scalar_prefetch = 0 : i64, scratch_operands = 0 : i64, tpu.core_type = #tpu.core_type<tc>, window_params = [{transform_indices = @transform_0, window_bounds = array<i64: 1, 2048>}, {transform_indices = @transform_1, window_bounds = array<i64: 1, 2048>}, {transform_indices = @transform_2, window_bounds = array<i64: 1, 2048>}, {transform_indices = @transform_3, window_bounds = array<i64: 1, 2048>}]} {
    %c0 = arith.constant 0 : index
    %c0_0 = arith.constant 0 : index
    %0 = vector.load %arg1[%c0, %c0_0] : memref<1x2048xf32, #tpu.memory_space<vmem>>, vector<1x2048xf32>
    %c0_1 = arith.constant 0 : index
    %c0_2 = arith.constant 0 : index
    %1 = vector.load %arg2[%c0_1, %c0_2] : memref<1x2048xf32, #tpu.memory_space<vmem>>, vector<1x2048xf32>
    %2 = arith.addf %0, %1 : vector<1x2048xf32>
    %c0_3 = arith.constant 0 : index
    %c0_4 = arith.constant 0 : index
    %3 = vector.load %arg3[%c0_3, %c0_4] : memref<1x2048xf32, #tpu.memory_space<vmem>>, vector<1x2048xf32>
    %4 = arith.addf %2, %3 : vector<1x2048xf32>
    %c0_5 = arith.constant 0 : index
    %c0_6 = arith.constant 0 : index
    %5 = vector.load %arg4[%c0_5, %c0_6] : memref<1x2048xf32, #tpu.memory_space<vmem>>, vector<1x2048xf32>
    tpu.vector_store %arg4[%c0_5, %c0_6], %4 {strides = array<i32>} : memref<1x2048xf32, #tpu.memory_space<vmem>>, vector<1x2048xf32>,
    return
  }
  func.func @transform_0(%arg0: i32) -> (i32, i32) {
    %c0_i32 = arith.constant 0 : i32
    %c0_i32_0 = arith.constant 0 : i32
    return %arg0, %c0_i32 : i32, i32
  }
  func.func @transform_1(%arg0: i32) -> (i32, i32) {
    %c0_i32 = arith.constant 0 : i32
    %c0_i32_0 = arith.constant 0 : i32
    return %arg0, %c0_i32 : i32, i32
  }
  func.func @transform_2(%arg0: i32) -> (i32, i32) {
    %c0_i32 = arith.constant 0 : i32
    %c0_i32_0 = arith.constant 0 : i32
    return %arg0, %c0_i32 : i32, i32
  }
  func.func @transform_3(%arg0: i32) -> (i32, i32) {
    %c0_i32 = arith.constant 0 : i32
    %c0_i32_0 = arith.constant 0 : i32
    return %arg0, %c0_i32 : i32, i32
  }
}

</mosaic_0001>

<bundles_post_ra>
// kernel: tpu_custom_call.1
= control target key start
LH: loop header
LB: loop body
LE: loop exit
PB: predicated region body
PF: predicated region fallthrough
CT: control target
= control target key end

     0   :  { %8 = vsyncpa [#allocation3], 0  ;;  %s248_s0 = inlined_call_operand.hbm [shape: f32[1,2048], index: 0, kind: input, shape index: {}]   ;;  %s249_s1 = inlined_call_operand.hbm [shape: f32[1,2048], index: 1, kind: input, shape index: {}]   ;;  %s250_s2 = inlined_call_operand.hbm [shape: f32[1,2048], index: 2, kind: input, shape index: {}]   ;;  %s251_s3 = inlined_call_operand.hbm [shape: f32[1,2048], index: 3, kind: output, shape index: {}]  }
   0x1   :  { %9 = vsyncpa [#allocation6], 0 }
   0x2   :  { %10 = vsyncpa [#allocation4], 0  ;;  %s176_s12 = smov [#allocation5]   ;;  %s177_s14 = smov [#allocation2]  }
   0x3   :  { %s27_s13 = sshll.u32 %s176_s12, 4  ;;  %s17_s15 = sshll.u32 %s177_s14, 4  ;;  %s28_s13 = int_to_ptr.vmem [resolvable:$true] %s27_s13  ;;  %s18_s15 = int_to_ptr.vmem [resolvable:$true] %s17_s15 }
   0x4   :  { %s82_s18 = scalar_lea.hbm %s249_s1, 256 }
   0x5   :  { %p83_p0 = scmp.ne.s32.totalorder %s249_s1, %s82_s18  ;;  %p86_p1 = scmp.lt.u32.totalorder %s82_s18, %s249_s1 }
   0x7   :  { %p88_p2 = pnand %p86_p1, %p83_p0 }
   0x9   :  { %91 = shalt.err (!%p88_p2)
}
   0xa   :  { %s92_s23 = scalar_lea.vmem %s28_s13, 256  ;;  %p97_p4 = scmp.lt.s32.totalorder %s28_s13, %s28_s13 }
   0xb   :  { %p93_p3 = scmp.ne.s32.totalorder %s28_s13, %s92_s23  ;;  %p98_p5 = scmp.lt.s32.totalorder %s92_s23, %s92_s23 }
   0xd   :  { %p99_p6 = por %p98_p5, %p97_p4 }
   0xf   :  { %p100_p7 = pnand %p99_p6, %p93_p3 }
  0x11   :  { %103 = shalt.err (!%p100_p7)
}
  0x12   :  { %30 = dma.hbm_to_vmem [thread:$0]  %s249_s1, 256, %s28_s13, [#allocation6]  }
  0x13   :  { %s104_s28 = scalar_lea.hbm %s248_s0, 256 }
  0x14   :  { %p105_p8 = scmp.ne.s32.totalorder %s248_s0, %s104_s28  ;;  %p108_p9 = scmp.lt.u32.totalorder %s104_s28, %s248_s0 }
  0x16   :  { %p110_p10 = pnand %p108_p9, %p105_p8 }
  0x18   :  { %113 = shalt.err (!%p110_p10)
}
  0x19   :  { %s114_s6 = scalar_lea.vmem %s18_s15, 256  ;;  %p119_p12 = scmp.lt.s32.totalorder %s18_s15, %s18_s15 }
  0x1a   :  { %p115_p11 = scmp.ne.s32.totalorder %s18_s15, %s114_s6  ;;  %p120_p13 = scmp.lt.s32.totalorder %s114_s6, %s114_s6 }
  0x1c   :  { %p121_p0 = por %p120_p13, %p119_p12 }
  0x1e   :  { %p122_p1 = pnand %p121_p0, %p115_p11 }
  0x20   :  { %125 = shalt.err (!%p122_p1)
}
  0x21   :  { %20 = dma.hbm_to_vmem [thread:$0]  %s248_s0, 256, %s18_s15, [#allocation3]  }
  0x22   :  { %s178_s8 = smov [#allocation7]   ;;  %s126_s12 = scalar_lea.hbm %s250_s2, 256 }
  0x23   :  { %s37_s9 = sshll.u32 %s178_s8, 4  ;;  %p127_p2 = scmp.ne.s32.totalorder %s250_s2, %s126_s12  ;;  %s38_s9 = int_to_ptr.vmem [resolvable:$true] %s37_s9 }
  0x24   :  { %p130_p3 = scmp.lt.u32.totalorder %s126_s12, %s250_s2 }
  0x26   :  { %p132_p4 = pnand %p130_p3, %p127_p2 }
  0x28   :  { %135 = shalt.err (!%p132_p4)
}
  0x29   :  { %s136_s18 = scalar_lea.vmem %s38_s9, 256  ;;  %p141_p6 = scmp.lt.s32.totalorder %s38_s9, %s38_s9 }
  0x2a   :  { %p137_p5 = scmp.ne.s32.totalorder %s38_s9, %s136_s18  ;;  %p142_p7 = scmp.lt.s32.totalorder %s136_s18, %s136_s18 }
  0x2c   :  { %p143_p8 = por %p142_p7, %p141_p6 }
  0x2e   :  { %p144_p9 = pnand %p143_p8, %p137_p5 }
  0x30   :  { %147 = shalt.err (!%p144_p9)
}
  0x31   :  { %40 = dma.hbm_to_vmem [thread:$0]  %s250_s2, 256, %s38_s9, [#allocation6]  }
  0x32   :  { %170 = dma.done.wait [#allocation3], 256  }
  0x33   :  { %171 = vsyncadd [#allocation3], 4294967040 }
  0x34   :  { %172 = dma.done.wait [#allocation6], 512  }
  0x35   :  { %173 = vsyncadd [#allocation6], 4294966784  ;;  %v50_v0 = vld [vmem:[#allocation2] sm:$0xff]  ;;  %v52_v1 = vld [vmem:[#allocation5] sm:$0xff]  ;;  %s179_s19 = smov [#allocation8]  }
  0x36   :  { %v56_v2 = vld [vmem:[#allocation7] sm:$0xff]  ;;  %v54_v3 = vadd.f32 %v52_v1, %v50_v0  ;;  %v51_v4 = vld [vmem:[#allocation2 + $0x8] sm:$0xff]  ;;  %v53_v5 = vld [vmem:[#allocation5 + $0x8] sm:$0xff]  ;;  %s68_s20 = sshll.u32 %s179_s19, 4  ;;  %s69_s20 = int_to_ptr.vmem [resolvable:$true] %s68_s20 }
  0x37   :  { %v57_v6 = vld [vmem:[#allocation7 + $0x8] sm:$0xff]  ;;  %v55_v7 = vadd.f32 %v53_v5, %v51_v4  ;;  %s148_s2 = scalar_lea.vmem %s69_s20, 256  ;;  %p153_p11 = scmp.lt.s32.totalorder %s69_s20, %s69_s20 }
  0x38   :  { %v58_v8 = vadd.f32 %v56_v2, %v54_v3  ;;  %p149_p10 = scmp.ne.s32.totalorder %s69_s20, %s148_s2  ;;  %p154_p12 = scmp.lt.s32.totalorder %s148_s2, %s148_s2 }
  0x39   :  { %v59_v9 = vadd.f32 %v57_v6, %v55_v7 }
  0x3a   :  { %60 = vst [vmem:[#allocation8] sm:$0xff] %v58_v8  ;;  %p155_p13 = por %p154_p12, %p153_p11 }
  0x3b   :  { %61 = vst [vmem:[#allocation8 + $0x8] sm:$0xff] %v59_v9 }
  0x3c   :  { %p156_p0 = pnand %p155_p13, %p149_p10 }
  0x3e   :  { %159 = shalt.err (!%p156_p0)
}
  0x3f   :  { %s160_s23 = scalar_lea.hbm %s251_s3, 256 }
  0x40   :  { %p161_p1 = scmp.ne.s32.totalorder %s251_s3, %s160_s23  ;;  %p164_p2 = scmp.lt.u32.totalorder %s160_s23, %s251_s3 }
  0x42   :  { %p166_p3 = pnand %p164_p2, %p161_p1 }
  0x44   :  { %169 = shalt.err (!%p166_p3)
}
  0x45   :  { %71 = dma.vmem_to_hbm [thread:$0]  %s69_s20, 256, %s251_s3, [#allocation4]  }
  0x46   :  { %174 = dma.done.wait [#allocation4], 256  }
  0x47   :  { %175 = vsyncadd [#allocation4], 4294967040 }
  0x48   :  { %75 = vsyncpa [#allocation3], 1 }
  0x49   :  { %76 = vsyncpa [#allocation6], 1 }
  0x4a   :  { %77 = vsyncpa [#allocation4], 1 }

</bundles_post_ra>
